<compile_context>
chip_gen: v6e
topology: v6e:2x2x1
jax: 0.10.0
libtpu: 0.0.40
codegen_flags: <defaults>
</compile_context>

<pallas_src>
import math

import jax
import jax.numpy as jnp
from jax.experimental import pallas as pl
from jax.experimental.pallas import tpu as pltpu

_EPS = 1e-5
_LANE = 128


def _ln_kernel_packed(x_ref, w_ref, b_ref, p_ref, o_ref):
    # x_ref: (tile, lane_w); w_ref/b_ref: (1, lane_w) f32
    # p_ref: (lane_w, lane_w) f32 block-diagonal averaging matrix (each CxC
    # block == 1/C).  One MXU matmul per reduction gives the per-group mean
    # already broadcast back across the lanes (no cross-lane relayout).
    x = x_ref[...].astype(jnp.float32)
    p = p_ref[...]
    mu = jnp.dot(x, p, preferred_element_type=jnp.float32)
    xc = x - mu
    var = jnp.dot(xc * xc, p, preferred_element_type=jnp.float32)  # unbiased=False
    inv = jax.lax.rsqrt(var + _EPS)
    o_ref[...] = (xc * inv * w_ref[...] + b_ref[...]).astype(o_ref.dtype)


def _ln_kernel_plain(x_ref, w_ref, b_ref, o_ref):
    # x_ref: (tile, C) with C a multiple of 128 (already lane-dense) or the
    # rare awkward-C fallback; w_ref/b_ref: (1, C) f32.
    x = x_ref[...].astype(jnp.float32)
    mu = jnp.mean(x, axis=-1, keepdims=True)
    xc = x - mu
    var = jnp.mean(xc * xc, axis=-1, keepdims=True)                 # unbiased=False
    inv = jax.lax.rsqrt(var + _EPS)
    o_ref[...] = (xc * inv * w_ref[...] + b_ref[...]).astype(o_ref.dtype)


def _vmem_capacity_bytes():
    try:
        return int(pltpu.get_tpu_info().vmem_capacity_bytes)
    except Exception:
        return 64 * 2**20  # conservative default (v7x per-TensorCore VMEM)


def with_bias_layernorm(x, weight, bias, *, target_block_bytes=4 * 1024 * 1024):
    """x: (..., C); weight, bias: (C,). LayerNorm over last dim (eps=1e-5)."""
    orig_shape = x.shape
    C = orig_shape[-1]
    rows = 1
    for d in orig_shape[:-1]:
        rows *= d
    x2 = x.reshape(rows, C)
    itemsize = x2.dtype.itemsize

    # ---- lane-dense packing: k rows per 128-lane-aligned slab --------------
    # Smallest k with k*C % 128 == 0; only pack when the slab (and the P
    # matrix / MXU work per element) stays small.  C % 128 == 0 is already
    # lane-dense, so the plain VPU path is used there.
    k = 1
    if C % _LANE != 0:
        k_cand = _LANE // math.gcd(C, _LANE)
        if k_cand * C <= 512:
            k = k_cand
    lane_w = k * C

    pad_rows = (-rows) % k
    if pad_rows:
        # <= k-1 rows of zeros; keeps every store an unmasked full-width vst.
        x2 = jnp.pad(x2, ((0, pad_rows), (0, 0)))
    rows_pad = rows + pad_rows
    rows_p = rows_pad // k
    x2 = x2.reshape(rows_p, lane_w)

    # f32 params, repeated per packed group; constant index_map keeps them
    # resident in VMEM (no re-DMA per grid step).
    w = jnp.tile(weight.astype(jnp.float32).reshape(1, C), (1, k))
    b = jnp.tile(bias.astype(jnp.float32).reshape(1, C), (1, k))

    # ---- tile sizing from an explicit VMEM census ---------------------------
    vmem_budget = int(0.70 * _vmem_capacity_bytes())
    # Per tile-row: double-buffered input + output block (x.dtype) and roughly
    # 4 f32 block-sized temporaries inside the kernel (x_f32, mu/var, xc, prod).
    per_row_vmem = lane_w * (4 * itemsize + 4 * 4)
    fixed_vmem = 2 * 1024 * 1024 + 4 * lane_w * 4              # headroom + w, b
    if k > 1:
        fixed_vmem += 2 * lane_w * lane_w * 4                  # resident P

    tile_from_target = target_block_bytes // max(1, lane_w * itemsize)
    tile_from_vmem = (vmem_budget - fixed_vmem) // max(1, per_row_vmem)
    tile = max(8, min(tile_from_target, tile_from_vmem))
    tile = (tile // 8) * 8

    if tile >= rows_p:
        if rows_p >= 16 and rows_p * lane_w * itemsize >= 512 * 1024:
            # Keep >= 2 grid steps so v7x can shard the grid over both
            # TensorCores and DMA/compute overlap is preserved.
            tile = min(tile, ((pl.cdiv(rows_p, 2) + 7) // 8) * 8)
        else:
            tile = rows_p                                      # single full block
    grid = (pl.cdiv(rows_p, tile),)

    vmem_limit = int(min(vmem_budget,
                         max(16 * 1024 * 1024, tile * per_row_vmem + fixed_vmem)))
    compiler_params = pltpu.CompilerParams(
        dimension_semantics=("parallel",),
        vmem_limit_bytes=vmem_limit,
    )

    x_spec = pl.BlockSpec((tile, lane_w), lambda i: (i, 0))
    wb_spec = pl.BlockSpec((1, lane_w), lambda i: (0, 0))
    out_spec = pl.BlockSpec((tile, lane_w), lambda i: (i, 0))
    out_shape = jax.ShapeDtypeStruct((rows_p, lane_w), x.dtype)

    if k > 1:
        # Block-diagonal averaging matrix: kron(I_k, ones(C,C)/C).
        P = jnp.kron(jnp.eye(k, dtype=jnp.float32),
                     jnp.full((C, C), 1.0 / C, dtype=jnp.float32))
        out = pl.pallas_call(
            _ln_kernel_packed,
            out_shape=out_shape,
            grid_spec=pltpu.PrefetchScalarGridSpec(
                num_scalar_prefetch=0,
                grid=grid,
                in_specs=[x_spec, wb_spec, wb_spec,
                          pl.BlockSpec((lane_w, lane_w), lambda i: (0, 0))],
                out_specs=out_spec,
            ),
            compiler_params=compiler_params,
        )(x2, w, b, P)
    else:
        out = pl.pallas_call(
            _ln_kernel_plain,
            out_shape=out_shape,
            grid_spec=pltpu.PrefetchScalarGridSpec(
                num_scalar_prefetch=0,
                grid=grid,
                in_specs=[x_spec, wb_spec, wb_spec],
                out_specs=out_spec,
            ),
            compiler_params=compiler_params,
        )(x2, w, b)

    out = out.reshape(rows_pad, C)
    if pad_rows:
        out = out[:rows]
    return out.reshape(orig_shape)


def _reference(x, weight, bias):
    xf = x.astype(jnp.float32)
    mu = jnp.mean(xf, axis=-1, keepdims=True)
    var = jnp.mean((xf - mu) ** 2, axis=-1, keepdims=True)
    return (xf - mu) / jnp.sqrt(var + 1e-5) * weight.astype(jnp.float32) \
        + bias.astype(jnp.float32)


if __name__ == "__main__":
    key = jax.random.PRNGKey(0)

    # 1) Packed path: C=32 -> k=4, lane_w=128 (e.g. (B, H*W, C) from NCHW (2,32,16,16)).
    B, HW, C = 2, 256, 32
    x = jax.random.normal(key, (B, HW, C), dtype=jnp.float32)
    weight = jnp.ones((C,), dtype=jnp.float32)      # nn.Parameter(torch.ones)
    bias = jnp.zeros((C,), dtype=jnp.float32)       # nn.Parameter(torch.zeros)
    y = jax.block_until_ready(with_bias_layernorm(x, weight, bias))
    y_ref = _reference(x, weight, bias)
    assert jnp.allclose(y, y_ref, atol=1e-4, rtol=1e-4), float(jnp.max(jnp.abs(y - y_ref)))

    # 2) Plain path (C multiple of 128), single full-array block, odd row count.
    C2 = 256
    x2 = jax.random.normal(jax.random.PRNGKey(1), (4, 37, C2), dtype=jnp.float32)
    w2 = jax.random.normal(jax.random.PRNGKey(2), (C2,), dtype=jnp.float32)
    b2 = jax.random.normal(jax.random.PRNGKey(3), (C2,), dtype=jnp.float32)
    y2 = jax.block_until_ready(with_bias_layernorm(x2, w2, b2))
    assert jnp.allclose(y2, _reference(x2, w2, b2), atol=1e-4, rtol=1e-4)

    # 3) Generalized packing with row padding: C=48 -> k=8, lane_w=384, rows % k != 0.
    C3 = 48
    x3 = jax.random.normal(jax.random.PRNGKey(4), (3, 17, C3), dtype=jnp.float32)
    w3 = jax.random.normal(jax.random.PRNGKey(5), (C3,), dtype=jnp.float32)
    b3 = jax.random.normal(jax.random.PRNGKey(6), (C3,), dtype=jnp.float32)
    y3 = jax.block_until_ready(with_bias_layernorm(x3, w3, b3))
    assert jnp.allclose(y3, _reference(x3, w3, b3), atol=1e-4, rtol=1e-4)

    # 4) Multi-step grid with a clipped partial last block (tiny target block).
    x4 = jax.random.normal(jax.random.PRNGKey(7), (2, 100, 32), dtype=jnp.float32)
    y4 = jax.block_until_ready(
        with_bias_layernorm(x4, weight, bias, target_block_bytes=8 * 128 * 4))
    assert jnp.allclose(y4, _reference(x4, weight, bias), atol=1e-4, rtol=1e-4)

    # 5) Larger packed input (>= 512 KiB) -> grid is split into >= 2 parallel steps.
    x5 = jax.random.normal(jax.random.PRNGKey(8), (2, 4096, C3), dtype=jnp.float32)
    y5 = jax.block_until_ready(with_bias_layernorm(x5, w3, b3))
    assert jnp.allclose(y5, _reference(x5, w3, b3), atol=1e-4, rtol=1e-4)

    # 6) bf16 input (exercises byte-based tile sizing); loose tolerance for bf16 output.
    x6 = jax.random.normal(jax.random.PRNGKey(9), (2, 256, 32), dtype=jnp.bfloat16)
    y6 = jax.block_until_ready(with_bias_layernorm(x6, weight, bias))
    assert jnp.allclose(y6.astype(jnp.float32), _reference(x6, weight, bias),
                        atol=1e-1, rtol=5e-2)

    print("KERNEL_OK")
</pallas_src>

<mosaic_0001>
module attributes {stable_mosaic.version = 11 : i64} {
  func.func @_ln_kernel_packed(%arg0: i32, %arg1: memref<128x128xf32, #tpu.memory_space<vmem>>, %arg2: memref<1x128xf32, #tpu.memory_space<vmem>>, %arg3: memref<1x128xf32, #tpu.memory_space<vmem>>, %arg4: memref<128x128xf32, #tpu.memory_space<vmem>>, %arg5: memref<128x128xf32, #tpu.memory_space<vmem>>) attributes {dimension_semantics = [#tpu.dimension_semantics<parallel>], iteration_bounds = array<i64: 1>, scalar_prefetch = 0 : i64, scratch_operands = 0 : i64, tpu.core_type = #tpu.core_type<tc>, window_params = [{transform_indices = @transform_0, window_bounds = array<i64: 128, 128>}, {pipeline_mode = #tpu.pipeline_mode<synchronous>, transform_indices = @transform_1, window_bounds = array<i64: 1, 128>}, {pipeline_mode = #tpu.pipeline_mode<synchronous>, transform_indices = @transform_2, window_bounds = array<i64: 1, 128>}, {pipeline_mode = #tpu.pipeline_mode<synchronous>, transform_indices = @transform_3, window_bounds = array<i64: 128, 128>}, {transform_indices = @transform_4, window_bounds = array<i64: 128, 128>}]} {
    %c0 = arith.constant 0 : index
    %c0_0 = arith.constant 0 : index
    %0 = vector.load %arg1[%c0, %c0_0] : memref<128x128xf32, #tpu.memory_space<vmem>>, vector<128x128xf32>
    %c0_1 = arith.constant 0 : index
    %c0_2 = arith.constant 0 : index
    %1 = vector.load %arg4[%c0_1, %c0_2] : memref<128x128xf32, #tpu.memory_space<vmem>>, vector<128x128xf32>
    %cst = arith.constant dense<0.000000e+00> : vector<128x128xf32>
    %2 = tpu.matmul %0, %1, %cst {dimension_numbers = #tpu.dot_dimension_numbers<[1], [0], [0], [1], [0, 0, 1, 1], [], []>} : vector<128x128xf32>, vector<128x128xf32>, vector<128x128xf32> -> vector<128x128xf32>
    %3 = arith.subf %0, %2 : vector<128x128xf32>
    %4 = arith.mulf %3, %3 : vector<128x128xf32>
    %cst_3 = arith.constant dense<0.000000e+00> : vector<128x128xf32>
    %5 = tpu.matmul %4, %1, %cst_3 {dimension_numbers = #tpu.dot_dimension_numbers<[1], [0], [0], [1], [0, 0, 1, 1], [], []>} : vector<128x128xf32>, vector<128x128xf32>, vector<128x128xf32> -> vector<128x128xf32>
    %cst_4 = arith.constant 9.99999974E-6 : f32
    %6 = vector.broadcast %cst_4 : f32 to vector<128x128xf32>
    %7 = arith.addf %5, %6 : vector<128x128xf32>
    %8 = math.rsqrt %7 : vector<128x128xf32>
    %9 = arith.mulf %3, %8 : vector<128x128xf32>
    %c0_5 = arith.constant 0 : index
    %c0_6 = arith.constant 0 : index
    %10 = vector.load %arg2[%c0_5, %c0_6] : memref<1x128xf32, #tpu.memory_space<vmem>>, vector<1x128xf32>
    %11 = vector.broadcast %10 : vector<1x128xf32> to vector<128x128xf32>
    %12 = arith.mulf %9, %11 : vector<128x128xf32>
    %c0_7 = arith.constant 0 : index
    %c0_8 = arith.constant 0 : index
    %13 = vector.load %arg3[%c0_7, %c0_8] : memref<1x128xf32, #tpu.memory_space<vmem>>, vector<1x128xf32>
    %14 = vector.broadcast %13 : vector<1x128xf32> to vector<128x128xf32>
    %15 = arith.addf %12, %14 : vector<128x128xf32>
    %c0_9 = arith.constant 0 : index
    %c0_10 = arith.constant 0 : index
    %16 = vector.load %arg5[%c0_9, %c0_10] : memref<128x128xf32, #tpu.memory_space<vmem>>, vector<128x128xf32>
    tpu.vector_store %arg5[%c0_9, %c0_10], %15 {strides = array<i32>} : memref<128x128xf32, #tpu.memory_space<vmem>>, vector<128x128xf32>,
    return
  }
  func.func @transform_0(%arg0: i32) -> (i32, i32) {
    %c0_i32 = arith.constant 0 : i32
    %c0_i32_0 = arith.constant 0 : i32
    return %arg0, %c0_i32 : i32, i32
  }
  func.func @transform_1(%arg0: i32) -> (i32, i32) {
    %c0_i32 = arith.constant 0 : i32
    %c0_i32_0 = arith.constant 0 : i32
    %c0_i32_1 = arith.constant 0 : i32
    return %c0_i32, %c0_i32_0 : i32, i32
  }
  func.func @transform_2(%arg0: i32) -> (i32, i32) {
    %c0_i32 = arith.constant 0 : i32
    %c0_i32_0 = arith.constant 0 : i32
    %c0_i32_1 = arith.constant 0 : i32
    return %c0_i32, %c0_i32_0 : i32, i32
  }
  func.func @transform_3(%arg0: i32) -> (i32, i32) {
    %c0_i32 = arith.constant 0 : i32
    %c0_i32_0 = arith.constant 0 : i32
    %c0_i32_1 = arith.constant 0 : i32
    return %c0_i32, %c0_i32_0 : i32, i32
  }
  func.func @transform_4(%arg0: i32) -> (i32, i32) {
    %c0_i32 = arith.constant 0 : i32
    %c0_i32_0 = arith.constant 0 : i32
    return %arg0, %c0_i32 : i32, i32
  }
}

</mosaic_0001>

<bundles_post_ra>
// kernel: tpu_custom_call.1
= control target key start
LH: loop header
LB: loop body
LE: loop exit
PB: predicated region body
PF: predicated region fallthrough
CT: control target
= control target key end

     0   :  { %9 = vsyncpa [#allocation3], 0  ;;  %s967_s0 = inlined_call_operand.hbm [shape: f32[128,128], index: 0, kind: input, shape index: {}]   ;;  %s968_s1 = inlined_call_operand.vmem [shape: f32[1,128], index: 1, kind: input, shape index: {}]   ;;  %s969_s2 = inlined_call_operand.vmem [shape: f32[1,128], index: 2, kind: input, shape index: {}]   ;;  %s970_s3 = inlined_call_operand.hbm [shape: f32[128,128], index: 3, kind: input, shape index: {}]   ;;  %s971_s4 = inlined_call_operand.hbm [shape: f32[128,128], index: 4, kind: output, shape index: {}]  }
   0x1   :  { %10 = vsyncpa [#allocation6], 0 }
   0x2   :  { %11 = vsyncpa [#allocation4], 0  ;;  %s793_s15 = smov [#allocation2]  }
   0x3   :  { %s17_s16 = sshll.u32 %s793_s15, 4  ;;  %s18_s16 = int_to_ptr.vmem [resolvable:$true] %s17_s16 }
   0x4   :  { %s735_s17 = scalar_lea.vmem %s18_s16, 2048  ;;  %p740_p1 = scmp.lt.s32.totalorder %s18_s16, %s18_s16 }
   0x5   :  { %p736_p0 = scmp.ne.s32.totalorder %s18_s16, %s735_s17  ;;  %p741_p2 = scmp.lt.s32.totalorder %s735_s17, %s735_s17 }
   0x7   :  { %p742_p3 = por %p741_p2, %p740_p1 }
   0x9   :  { %p743_p4 = pnand %p742_p3, %p736_p0 }
   0xb   :  { %746 = shalt.err (!%p743_p4)
}
   0xc   :  { %s794_s18 = smov 128   ;;  %s795_s19 = smov 8  }
   0xd   :  { %23 = dma.hbm_to_vmem [thread:$0]  %s967_s0, 2048, %s18_s16, [#allocation3], %s794_s18, %s794_s18, %s795_s19  }
   0xe   :  { %s796_s22 = smov [#allocation5]  }
   0xf   :  { %s33_s23 = sshll.u32 %s796_s22, 4  ;;  %s34_s23 = int_to_ptr.vmem [resolvable:$true] %s33_s23 }
  0x10   :  { %s755_s24 = scalar_lea.vmem %s34_s23, 2048  ;;  %p760_p6 = scmp.lt.s32.totalorder %s34_s23, %s34_s23 }
  0x11   :  { %p756_p5 = scmp.ne.s32.totalorder %s34_s23, %s755_s24  ;;  %p761_p7 = scmp.lt.s32.totalorder %s755_s24, %s755_s24 }
  0x13   :  { %p762_p8 = por %p761_p7, %p760_p6 }
  0x15   :  { %p763_p9 = pnand %p762_p8, %p756_p5 }
  0x17   :  { %766 = shalt.err (!%p763_p9)
}
  0x18   :  { %39 = dma.hbm_to_vmem [thread:$0]  %s970_s3, 2048, %s34_s23, [#allocation6], %s794_s18, %s794_s18, %s795_s19  }
  0x19   :  { %787 = dma.done.wait [#allocation3], 2048  }
  0x1a   :  { %788 = vsyncadd [#allocation3], 4294965248 }
  0x1b   :  { %789 = dma.done.wait [#allocation6], 2048  }
  0x1c   :  { %790 = vsyncadd [#allocation6], 4294965248  ;;  %v77_v0 = vld [vmem:[#allocation5 + $0x78] sm:$0xff]  ;;  %v76_v1 = vld [vmem:[#allocation5 + $0x70] sm:$0xff] }
  0x1d   :  { %578 = vmatprep.subr.mxu0 %v77_v0  ;;  %634 = vmatprep.subr.mxu1 %v77_v0  ;;  %v75_v2 = vld [vmem:[#allocation5 + $0x68] sm:$0xff]  ;;  %v74_v3 = vld [vmem:[#allocation5 + $0x60] sm:$0xff]  ;;  %v73_v5 = vld [vmem:[#allocation5 + $0x58] sm:$0xff] }
  0x1e   :  { %579 = vmatpush3.msra.mxu0 %v77_v0  ;;  %635 = vmatpush3.msra.mxu1 %v77_v0  ;;  %v835_v4 = vld [vmem:[#allocation2] sm:$0xff]  ;;  %v72_v6 = vld [vmem:[#allocation5 + $0x50] sm:$0xff]  ;;  %v71_v7 = vld [vmem:[#allocation5 + $0x48] sm:$0xff] }
  0x1f   :  { %580 = vmatprep.subr.mxu0 %v76_v1  ;;  %636 = vmatprep.subr.mxu1 %v76_v1  ;;  %v70_v8 = vld [vmem:[#allocation5 + $0x40] sm:$0xff]  ;;  %v69_v9 = vld [vmem:[#allocation5 + $0x38] sm:$0xff]  ;;  %v68_v10 = vld [vmem:[#allocation5 + $0x30] sm:$0xff] }
  0x20   :  { %581 = vmatpush3.msra.mxu0 %v76_v1  ;;  %637 = vmatpush3.msra.mxu1 %v76_v1  ;;  %v67_v11 = vld [vmem:[#allocation5 + $0x28] sm:$0xff]  ;;  %v66_v12 = vld [vmem:[#allocation5 + $0x20] sm:$0xff]  ;;  %v65_v13 = vld [vmem:[#allocation5 + $0x18] sm:$0xff] }
  0x21   :  { %582 = vmatprep.subr.mxu0 %v75_v2  ;;  %638 = vmatprep.subr.mxu1 %v75_v2  ;;  %v64_v14 = vld [vmem:[#allocation5 + $0x10] sm:$0xff]  ;;  %v63_v15 = vld [vmem:[#allocation5 + $0x8] sm:$0xff]  ;;  %v62_v16 = vld [vmem:[#allocation5] sm:$0xff] }
  0x22   :  { %583 = vmatpush3.msra.mxu0 %v75_v2  ;;  %610 = vmatprep.mubr.f32.mxu0 %v835_v4  ;;  %v47_v17 = vld [vmem:[#allocation2 + $0x8] sm:$0xff]  ;;  %v48_v18 = vld [vmem:[#allocation2 + $0x10] sm:$0xff]  ;;  %v49_v19 = vld [vmem:[#allocation2 + $0x18] sm:$0xff] }
  0x23   :  { %584 = vmatprep.subr.mxu0 %v74_v3  ;;  %639 = vmatpush3.msra.mxu1 %v75_v2  ;;  %v50_v20 = vld [vmem:[#allocation2 + $0x20] sm:$0xff]  ;;  %v51_v21 = vld [vmem:[#allocation2 + $0x28] sm:$0xff]  ;;  %v52_v22 = vld [vmem:[#allocation2 + $0x30] sm:$0xff] }
  0x24   :  { %585 = vmatpush3.msra.mxu0 %v74_v3  ;;  %640 = vmatprep.subr.mxu1 %v74_v3  ;;  %v53_v23 = vld [vmem:[#allocation2 + $0x38] sm:$0xff]  ;;  %v54_v24 = vld [vmem:[#allocation2 + $0x40] sm:$0xff]  ;;  %v55_v25 = vld [vmem:[#allocation2 + $0x48] sm:$0xff] }
  0x25   :  { %586 = vmatprep.subr.mxu0 %v73_v5  ;;  %641 = vmatpush3.msra.mxu1 %v74_v3  ;;  %v56_v26 = vld [vmem:[#allocation2 + $0x50] sm:$0xff]  ;;  %v57_v27 = vld [vmem:[#allocation2 + $0x58] sm:$0xff]  ;;  %v58_v28 = vld [vmem:[#allocation2 + $0x60] sm:$0xff] }
  0x26   :  { %587 = vmatpush3.msra.mxu0 %v73_v5  ;;  %642 = vmatprep.subr.mxu1 %v73_v5  ;;  %v59_v29 = vld [vmem:[#allocation2 + $0x68] sm:$0xff]  ;;  %v60_v30 = vld [vmem:[#allocation2 + $0x70] sm:$0xff]  ;;  %v61_v31 = vld [vmem:[#allocation2 + $0x78] sm:$0xff] }
  0x27   :  { %588 = vmatprep.subr.mxu0 %v72_v6  ;;  %643 = vmatpush3.msra.mxu1 %v73_v5 }
  0x28   :  { %589 = vmatpush3.msra.mxu0 %v72_v6  ;;  %644 = vmatprep.subr.mxu1 %v72_v6 }
  0x29   :  { %590 = vmatprep.subr.mxu0 %v71_v7  ;;  %645 = vmatpush3.msra.mxu1 %v72_v6 }
  0x2a   :  { %591 = vmatpush3.msra.mxu0 %v71_v7  ;;  %646 = vmatprep.subr.mxu1 %v71_v7 }
  0x2b   :  { %592 = vmatprep.subr.mxu0 %v70_v8  ;;  %647 = vmatpush3.msra.mxu1 %v71_v7 }
  0x2c   :  { %593 = vmatpush3.msra.mxu0 %v70_v8  ;;  %648 = vmatprep.subr.mxu1 %v70_v8 }
  0x2d   :  { %594 = vmatprep.subr.mxu0 %v69_v9  ;;  %649 = vmatpush3.msra.mxu1 %v70_v8 }
  0x2e   :  { %595 = vmatpush3.msra.mxu0 %v69_v9  ;;  %650 = vmatprep.subr.mxu1 %v69_v9 }
  0x2f   :  { %596 = vmatprep.subr.mxu0 %v68_v10  ;;  %651 = vmatpush3.msra.mxu1 %v69_v9 }
  0x30   :  { %597 = vmatpush3.msra.mxu0 %v68_v10  ;;  %652 = vmatprep.subr.mxu1 %v68_v10 }
  0x31   :  { %598 = vmatprep.subr.mxu0 %v67_v11  ;;  %653 = vmatpush3.msra.mxu1 %v68_v10 }
  0x32   :  { %599 = vmatpush3.msra.mxu0 %v67_v11  ;;  %654 = vmatprep.subr.mxu1 %v67_v11 }
  0x33   :  { %600 = vmatprep.subr.mxu0 %v66_v12  ;;  %655 = vmatpush3.msra.mxu1 %v67_v11 }
  0x34   :  { %601 = vmatpush3.msra.mxu0 %v66_v12  ;;  %656 = vmatprep.subr.mxu1 %v66_v12 }
  0x35   :  { %602 = vmatprep.subr.mxu0 %v65_v13  ;;  %657 = vmatpush3.msra.mxu1 %v66_v12 }
  0x36   :  { %603 = vmatpush3.msra.mxu0 %v65_v13  ;;  %658 = vmatprep.subr.mxu1 %v65_v13 }
  0x37   :  { %604 = vmatprep.subr.mxu0 %v64_v14  ;;  %659 = vmatpush3.msra.mxu1 %v65_v13 }
  0x38   :  { %605 = vmatpush3.msra.mxu0 %v64_v14  ;;  %660 = vmatprep.subr.mxu1 %v64_v14 }
  0x39   :  { %606 = vmatprep.subr.mxu0 %v63_v15  ;;  %661 = vmatpush3.msra.mxu1 %v64_v14 }
  0x3a   :  { %607 = vmatpush3.msra.mxu0 %v63_v15  ;;  %662 = vmatprep.subr.mxu1 %v63_v15 }
  0x3b   :  { %608 = vmatprep.subr.mxu0 %v62_v16  ;;  %663 = vmatpush3.msra.mxu1 %v63_v15 }
  0x3c   :  { %609 = vmatpush3.msra.mxu0 %v62_v16  ;;  %664 = vmatprep.subr.mxu1 %v62_v16 }
  0x3d   :  { %611 = vmatmul.mubr.f32.vlgmr.msra.gmra.mxu0 %v47_v17  ;;  %665 = vmatpush3.msra.mxu1 %v62_v16 }
  0x3e   :  { %613 = vmatprep.mubr.f32.mxu0 %v48_v18 }
  0x41   :  { %614 = vmatmul.mubr.f32.gmra.mxu0 %v49_v19 }
  0x42   :  { %616 = vmatprep.mubr.f32.mxu0 %v50_v20 }
  0x45   :  { %617 = vmatmul.mubr.f32.gmra.mxu0 %v51_v21 }
  0x46   :  { %619 = vmatprep.mubr.f32.mxu0 %v52_v22 }
  0x49   :  { %620 = vmatmul.mubr.f32.gmra.mxu0 %v53_v23 }
  0x4a   :  { %622 = vmatprep.mubr.f32.mxu0 %v54_v24 }
  0x4d   :  { %623 = vmatmul.mubr.f32.gmra.mxu0 %v55_v25 }
  0x4e   :  { %625 = vmatprep.mubr.f32.mxu0 %v56_v26 }
  0x51   :  { %626 = vmatmul.mubr.f32.gmra.mxu0 %v57_v27 }
  0x52   :  { %628 = vmatprep.mubr.f32.mxu0 %v58_v28 }
  0x55   :  { %629 = vmatmul.mubr.f32.gmra.mxu0 %v59_v29 }
  0x56   :  { %631 = vmatprep.mubr.f32.mxu0 %v60_v30 }
  0x59   :  { %632 = vmatmul.mubr.f32.gmra.mxu0 %v61_v31 }
  0xfd   :  { %v612_v32 = vpop.f32.mrf.mxu0 }
  0xfe   :  { %v838_v33 = vsub.f32 %v47_v17, %v612_v32 }
  0xff   :  { %v144_v34 = vpop.f32.mrf.mxu0 }
 0x100   :  { %v841_v35 = vsub.f32 %v835_v4, %v144_v34  ;;  %v240_v38 = vmul.f32 %v838_v33, %v838_v33  ;;  %v906_v34 = vld [vmem:[%s968_s1] ss:$0 sm:$0xff]  ;;  %s797_s1 = smov [#allocation7]  }
 0x101   :  { %v615_v36 = vpop.f32.mrf.mxu0 }
 0x102   :  { %v239_v37 = vmul.f32 %v841_v35, %v841_v35  ;;  %v847_v39 = vsub.f32 %v49_v19, %v615_v36 }
 0x103   :  { %v154_v40 = vpop.f32.mrf.mxu0 }
 0x104   :  { %v849_v41 = vsub.f32 %v48_v18, %v154_v40  ;;  %666 = vmatprep.mubr.f32.mxu1 %v239_v37  ;;  %v242_v44 = vmul.f32 %v847_v39, %v847_v39 }
 0x105   :  { %v618_v42 = vpop.f32.mrf.mxu0  ;;  %667 = vmatmul.mubr.f32.vlgmr.msra.gmra.mxu1 %v240_v38 }
 0x106   :  { %v241_v43 = vmul.f32 %v849_v41, %v849_v41  ;;  %v855_v45 = vsub.f32 %v51_v21, %v618_v42  ;;  %v912_v42 = vld [vmem:[%s969_s2] ss:$0 sm:$0xff]  ;;  %s499_s2 = sshll.u32 %s797_s1, 4  ;;  %s500_s2 = int_to_ptr.vmem [resolvable:$true] %s499_s2 }
 0x107   :  { %v164_v46 = vpop.f32.mrf.mxu0  ;;  %s767_s29 = scalar_lea.vmem %s500_s2, 2048  ;;  %p772_p11 = scmp.lt.s32.totalorder %s500_s2, %s500_s2 }
 0x108   :  { %v857_v47 = vsub.f32 %v50_v20, %v164_v46  ;;  %669 = vmatprep.mubr.f32.mxu1 %v241_v43  ;;  %v244_v50 = vmul.f32 %v855_v45, %v855_v45  ;;  %p768_p10 = scmp.ne.s32.totalorder %s500_s2, %s767_s29  ;;  %p773_p12 = scmp.lt.s32.totalorder %s767_s29, %s767_s29 }
 0x109   :  { %v621_v48 = vpop.f32.mrf.mxu0  ;;  %670 = vmatmul.mubr.f32.gmra.mxu1 %v242_v44 }
 0x10a   :  { %v243_v49 = vmul.f32 %v857_v47, %v857_v47  ;;  %v863_v51 = vsub.f32 %v53_v23, %v621_v48  ;;  %p774_p13 = por %p773_p12, %p772_p11 }
 0x10b   :  { %v174_v52 = vpop.f32.mrf.mxu0 }
 0x10c   :  { %v865_v53 = vsub.f32 %v52_v22, %v174_v52  ;;  %672 = vmatprep.mubr.f32.mxu1 %v243_v49  ;;  %v246_v56 = vmul.f32 %v863_v51, %v863_v51  ;;  %p775_p0 = pnand %p774_p13, %p768_p10 }
 0x10d   :  { %v624_v54 = vpop.f32.mrf.mxu0  ;;  %673 = vmatmul.mubr.f32.gmra.mxu1 %v244_v50 }
 0x10e   :  { %v245_v55 = vmul.f32 %v865_v53, %v865_v53  ;;  %v871_v57 = vsub.f32 %v55_v25, %v624_v54 }
 0x10f   :  { %v184_v58 = vpop.f32.mrf.mxu0 }
 0x110   :  { %v873_v59 = vsub.f32 %v54_v24, %v184_v58  ;;  %675 = vmatprep.mubr.f32.mxu1 %v245_v55  ;;  %v248_v62 = vmul.f32 %v871_v57, %v871_v57 }
 0x111   :  { %v627_v60 = vpop.f32.mrf.mxu0  ;;  %676 = vmatmul.mubr.f32.gmra.mxu1 %v246_v56 }
 0x112   :  { %v247_v61 = vmul.f32 %v873_v59, %v873_v59  ;;  %v879_v63 = vsub.f32 %v57_v27, %v627_v60 }
 0x113   :  { %v194_v0 = vpop.f32.mrf.mxu0 }
 0x114   :  { %v881_v1 = vsub.f32 %v56_v26, %v194_v0  ;;  %678 = vmatprep.mubr.f32.mxu1 %v247_v61  ;;  %v250_v4 = vmul.f32 %v879_v63, %v879_v63 }
 0x115   :  { %v630_v2 = vpop.f32.mrf.mxu0  ;;  %679 = vmatmul.mubr.f32.gmra.mxu1 %v248_v62 }
 0x116   :  { %v249_v3 = vmul.f32 %v881_v1, %v881_v1  ;;  %v887_v5 = vsub.f32 %v59_v29, %v630_v2 }
 0x117   :  { %v204_v6 = vpop.f32.mrf.mxu0 }
 0x118   :  { %v889_v7 = vsub.f32 %v58_v28, %v204_v6  ;;  %681 = vmatprep.mubr.f32.mxu1 %v249_v3  ;;  %v252_v10 = vmul.f32 %v887_v5, %v887_v5 }
 0x119   :  { %v633_v8 = vpop.f32.mrf.mxu0  ;;  %682 = vmatmul.mubr.f32.gmra.mxu1 %v250_v4 }
 0x11a   :  { %v251_v9 = vmul.f32 %v889_v7, %v889_v7  ;;  %v895_v11 = vsub.f32 %v61_v31, %v633_v8 }
 0x11b   :  { %v214_v12 = vpop.f32.mrf.mxu0 }
 0x11c   :  { %v897_v13 = vsub.f32 %v60_v30, %v214_v12  ;;  %684 = vmatprep.mubr.f32.mxu1 %v251_v9  ;;  %v254_v15 = vmul.f32 %v895_v11, %v895_v11 }
 0x11d   :  { %685 = vmatmul.mubr.f32.gmra.mxu1 %v252_v10 }
 0x11e   :  { %v253_v14 = vmul.f32 %v897_v13, %v897_v13 }
 0x120   :  { %687 = vmatprep.mubr.f32.mxu1 %v253_v14 }
 0x121   :  { %688 = vmatmul.mubr.f32.gmra.mxu1 %v254_v15 }
 0x1c5   :  { %v668_v16 = vpop.f32.mrf.mxu1 }
 0x1c6   :  { %v327_v17 = vadd.f32 1e-05, %v668_v16 }
 0x1c7   :  { %v321_v18 = vpop.f32.mrf.mxu1 }
 0x1c8   :  { %695 = vrsqrt.f32 %v327_v17  ;;  %v322_v19 = vadd.f32 1e-05, %v321_v18 }
 0x1c9   :  { %v671_v20 = vpop.f32.mrf.mxu1 }
 0x1ca   :  { %697 = vrsqrt.f32 %v322_v19  ;;  %v337_v21 = vadd.f32 1e-05, %v671_v20 }
 0x1cb   :  { %v331_v22 = vpop.f32.mrf.mxu1 }
 0x1cc   :  { %699 = vrsqrt.f32 %v337_v21  ;;  %v332_v23 = vadd.f32 1e-05, %v331_v22 }
 0x1cd   :  { %v674_v24 = vpop.f32.mrf.mxu1 }
 0x1ce   :  { %701 = vrsqrt.f32 %v332_v23  ;;  %v347_v25 = vadd.f32 1e-05, %v674_v24 }
 0x1cf   :  { %v341_v26 = vpop.f32.mrf.mxu1 }
 0x1d0   :  { %703 = vrsqrt.f32 %v347_v25  ;;  %v342_v27 = vadd.f32 1e-05, %v341_v26 }
 0x1d1   :  { %v677_v28 = vpop.f32.mrf.mxu1 }
 0x1d2   :  { %705 = vrsqrt.f32 %v342_v27  ;;  %v357_v29 = vadd.f32 1e-05, %v677_v28 }
 0x1d3   :  { %v351_v30 = vpop.f32.mrf.mxu1 }
 0x1d4   :  { %707 = vrsqrt.f32 %v357_v29  ;;  %v352_v31 = vadd.f32 1e-05, %v351_v30 }
 0x1d5   :  { %v696_v32 = vpop.eup %695  ;;  %v680_v36 = vpop.f32.mrf.mxu1 }
 0x1d6   :  { %v417_v37 = vmul.f32 %v696_v32, %v838_v33  ;;  %709 = vrsqrt.f32 %v352_v31  ;;  %v367_v38 = vadd.f32 1e-05, %v680_v36 }
 0x1d7   :  { %v698_v40 = vpop.eup %697  ;;  %v361_v43 = vpop.f32.mrf.mxu1 }
 0x1d8   :  { %v440_v44 = vmul.f32 %v906_v34, %v417_v37  ;;  %v416_v46 = vmul.f32 %v698_v40, %v841_v35  ;;  %711 = vrsqrt.f32 %v367_v38  ;;  %v362_v48 = vadd.f32 1e-05, %v361_v43 }
 0x1d9   :  { %v700_v49 = vpop.eup %699  ;;  %v683_v50 = vpop.f32.mrf.mxu1 }
 0x1da   :  { %v463_v52 = vadd.f32 %v912_v42, %v440_v44  ;;  %v439_v33 = vmul.f32 %v906_v34, %v416_v46  ;;  %v419_v54 = vmul.f32 %v700_v49, %v847_v39  ;;  %713 = vrsqrt.f32 %v362_v48 }
 0x1db   :  { %v702_v55 = vpop.eup %701  ;;  %v377_v56 = vadd.f32 1e-05, %v683_v50  ;;  %v371_v58 = vpop.f32.mrf.mxu1 }
 0x1dc   :  { %479 = vst [vmem:[#allocation7 + $0x8] sm:$0xff] %v463_v52  ;;  %v462_v60 = vadd.f32 %v912_v42, %v439_v33  ;;  %v442_v61 = vmul.f32 %v906_v34, %v419_v54  ;;  %v418_v35 = vmul.f32 %v702_v55, %v849_v41  ;;  %v372_v62 = vadd.f32 1e-05, %v371_v58 }
 0x1dd   :  { %v704_v0 = vpop.eup %703  ;;  %715 = vrsqrt.f32 %v377_v56  ;;  %v686_v2 = vpop.f32.mrf.mxu1 }
 0x1de   :  { %478 = vst [vmem:[#allocation7] sm:$0xff] %v462_v60  ;;  %v465_v3 = vadd.f32 %v912_v42, %v442_v61  ;;  %v441_v39 = vmul.f32 %v906_v34, %v418_v35  ;;  %v421_v4 = vmul.f32 %v704_v0, %v855_v45  ;;  %717 = vrsqrt.f32 %v372_v62 }
 0x1df   :  { %v706_v6 = vpop.eup %705  ;;  %v387_v8 = vadd.f32 1e-05, %v686_v2  ;;  %v381_v9 = vpop.f32.mrf.mxu1 }
 0x1e0   :  { %481 = vst [vmem:[#allocation7 + $0x18] sm:$0xff] %v465_v3  ;;  %v464_v10 = vadd.f32 %v912_v42, %v441_v39  ;;  %v444_v41 = vmul.f32 %v906_v34, %v421_v4  ;;  %v420_v12 = vmul.f32 %v706_v6, %v857_v47  ;;  %v382_v14 = vadd.f32 1e-05, %v381_v9 }
 0x1e1   :  { %v708_v15 = vpop.eup %707  ;;  %719 = vrsqrt.f32 %v387_v8  ;;  %v689_v16 = vpop.f32.mrf.mxu1 }
 0x1e2   :  { %480 = vst [vmem:[#allocation7 + $0x10] sm:$0xff] %v464_v10  ;;  %v467_v17 = vadd.f32 %v912_v42, %v444_v41  ;;  %v443_v45 = vmul.f32 %v906_v34, %v420_v12  ;;  %v423_v18 = vmul.f32 %v708_v15, %v863_v51  ;;  %721 = vrsqrt.f32 %v382_v14 }
 0x1e3   :  { %v710_v19 = vpop.eup %709  ;;  %v397_v20 = vadd.f32 1e-05, %v689_v16  ;;  %v391_v21 = vpop.f32.mrf.mxu1 }
 0x1e4   :  { %483 = vst [vmem:[#allocation7 + $0x28] sm:$0xff] %v467_v17  ;;  %v466_v22 = vadd.f32 %v912_v42, %v443_v45  ;;  %v446_v47 = vmul.f32 %v906_v34, %v423_v18  ;;  %v422_v23 = vmul.f32 %v710_v19, %v865_v53  ;;  %v392_v24 = vadd.f32 1e-05, %v391_v21 }
 0x1e5   :  { %v712_v25 = vpop.eup %711  ;;  %723 = vrsqrt.f32 %v397_v20 }
 0x1e6   :  { %482 = vst [vmem:[#allocation7 + $0x20] sm:$0xff] %v466_v22  ;;  %v469_v26 = vadd.f32 %v912_v42, %v446_v47  ;;  %v445_v27 = vmul.f32 %v906_v34, %v422_v23  ;;  %v425_v51 = vmul.f32 %v712_v25, %v871_v57  ;;  %725 = vrsqrt.f32 %v392_v24 }
 0x1e7   :  { %v714_v28 = vpop.eup %713 }
 0x1e8   :  { %485 = vst [vmem:[#allocation7 + $0x38] sm:$0xff] %v469_v26  ;;  %v468_v29 = vadd.f32 %v912_v42, %v445_v27  ;;  %v448_v30 = vmul.f32 %v906_v34, %v425_v51  ;;  %v424_v31 = vmul.f32 %v714_v28, %v873_v59 }
 0x1ea   :  { %v716_v53 = vpop.eup %715  ;;  %484 = vst [vmem:[#allocation7 + $0x30] sm:$0xff] %v468_v29  ;;  %v471_v32 = vadd.f32 %v912_v42, %v448_v30  ;;  %v447_v36 = vmul.f32 %v906_v34, %v424_v31 }
 0x1eb   :  { %v718_v37 = vpop.eup %717  ;;  %v427_v38 = vmul.f32 %v716_v53, %v879_v63 }
 0x1ec   :  { %487 = vst [vmem:[#allocation7 + $0x48] sm:$0xff] %v471_v32  ;;  %v470_v57 = vadd.f32 %v912_v42, %v447_v36  ;;  %v426_v40 = vmul.f32 %v718_v37, %v881_v1 }
 0x1ed   :  { %v450_v43 = vmul.f32 %v906_v34, %v427_v38 }
 0x1ee   :  { %v720_v44 = vpop.eup %719  ;;  %486 = vst [vmem:[#allocation7 + $0x40] sm:$0xff] %v470_v57  ;;  %v449_v59 = vmul.f32 %v906_v34, %v426_v40 }
 0x1ef   :  { %v722_v46 = vpop.eup %721  ;;  %v473_v48 = vadd.f32 %v912_v42, %v450_v43  ;;  %v429_v49 = vmul.f32 %v720_v44, %v887_v5 }
 0x1f0   :  { %v472_v50 = vadd.f32 %v912_v42, %v449_v59  ;;  %v428_v63 = vmul.f32 %v722_v46, %v889_v7 }
 0x1f1   :  { %489 = vst [vmem:[#allocation7 + $0x58] sm:$0xff] %v473_v48  ;;  %v452_v52 = vmul.f32 %v906_v34, %v429_v49 }
 0x1f2   :  { %v724_v33 = vpop.eup %723  ;;  %488 = vst [vmem:[#allocation7 + $0x50] sm:$0xff] %v472_v50  ;;  %v451_v1 = vmul.f32 %v906_v34, %v428_v63 }
 0x1f3   :  { %v726_v54 = vpop.eup %725  ;;  %v475_v55 = vadd.f32 %v912_v42, %v452_v52  ;;  %v431_v56 = vmul.f32 %v724_v33, %v895_v11 }
 0x1f4   :  { %v474_v58 = vadd.f32 %v912_v42, %v451_v1  ;;  %v430_v5 = vmul.f32 %v726_v54, %v897_v13 }
 0x1f5   :  { %491 = vst [vmem:[#allocation7 + $0x68] sm:$0xff] %v475_v55  ;;  %v454_v60 = vmul.f32 %v906_v34, %v431_v56 }
 0x1f6   :  { %490 = vst [vmem:[#allocation7 + $0x60] sm:$0xff] %v474_v58  ;;  %v453_v7 = vmul.f32 %v906_v34, %v430_v5 }
 0x1f7   :  { %v477_v61 = vadd.f32 %v912_v42, %v454_v60 }
 0x1f8   :  { %v476_v35 = vadd.f32 %v912_v42, %v453_v7 }
 0x1f9   :  { %493 = vst [vmem:[#allocation7 + $0x78] sm:$0xff] %v477_v61 }
 0x1fa   :  { %492 = vst [vmem:[#allocation7 + $0x70] sm:$0xff] %v476_v35 }
 0x1fb   :  { %778 = shalt.err (!%p775_p0)
}
 0x1fc   :  { %505 = dma.vmem_to_hbm [thread:$0]  %s500_s2, 2048, %s971_s4, [#allocation4], %s794_s18, %s794_s18, %s795_s19  }
 0x1fd   :  { %791 = dma.done.wait [#allocation4], 2048  }
 0x1fe   :  { %792 = vsyncadd [#allocation4], 4294965248 }
 0x1ff   :  { %509 = vsyncpa [#allocation3], 1 }
 0x200   :  { %510 = vsyncpa [#allocation6], 1 }
 0x201   :  { %511 = vsyncpa [#allocation4], 1 }

</bundles_post_ra>
